<compile_context>
chip_gen: v6e
topology: v6e:2x2x1
jax: 0.10.0
libtpu: 0.0.40
codegen_flags: <defaults>
</compile_context>

<pallas_src>
import jax
import jax.numpy as jnp
from jax.experimental import pallas as pl
from jax.experimental.pallas import tpu as pltpu


# ----------------------------------------------------------------------------
# Fused kernel:
#   patches_ref: (B*H*W, KH*KW*C_in)  im2col'd input, cols ordered (di, dj, c)
#   convw_ref:   (KH*KW*C_in, C_feat) conv taps, rows ordered (di, dj, c)
#   convb_ref:   (1, C_feat)
#   thrw_ref:    (C_feat, n_out)      thresholds Linear weight
#   thrb_ref:    (1, n_out)           thresholds Linear bias
#   out_ref:     (B, n_out)           sigmoid probabilities
# ----------------------------------------------------------------------------
def make_fused_kernel(B, HW, C_feat):
    def kernel(patches_ref, convw_ref, convb_ref, thrw_ref, thrb_ref, out_ref):
        # --- conv as ONE im2col GEMM on the MXU: (B*HW, 36) @ (36, C_feat) ---
        feat = jnp.dot(patches_ref[...], convw_ref[...],
                       preferred_element_type=jnp.float32)
        # bias + ReLU fused into the single pass over the activation
        feat = jnp.maximum(feat + convb_ref[...], 0.0)        # (B*HW, C_feat)

        # --- global average pool: reshape + cross-sublane mean (XLU slot) ---
        pooled = jnp.mean(feat.reshape(B, HW, C_feat), axis=1)  # (B, C_feat)

        # --- thresholds Linear + sigmoid ---
        logits = jnp.dot(pooled, thrw_ref[...],
                         preferred_element_type=jnp.float32) + thrb_ref[...]
        out_ref[...] = jax.nn.sigmoid(logits).astype(out_ref.dtype)

    return kernel


def _full_spec(shape):
    # single grid point, whole-array block (full dims satisfy the (8,128) rule)
    return pl.BlockSpec(shape, lambda: (0,) * len(shape))


def _im2col_nhwc(x_nhwc, kh=3, kw=3):
    """SAME-padded 3x3 im2col, column order (di, dj, c) to match conv_w rows."""
    B, H, W, C = x_nhwc.shape
    xp = jnp.pad(x_nhwc, ((0, 0), (1, 1), (1, 1), (0, 0)))
    patches = [xp[:, di:di + H, dj:dj + W, :]
               for di in range(kh) for dj in range(kw)]
    p = jnp.stack(patches, axis=3)                     # (B, H, W, kh*kw, C)
    return p.reshape(B * H * W, kh * kw * C)


@jax.jit
def ordinal_regression_forward(x_nchw, params):
    """Forward pass matching OrdinalRegression.forward (returns sigmoid probs)."""
    conv_w, conv_b = params["conv_w"], params["conv_b"]
    thr_w, thr_b = params["thr_w"], params["thr_b"]
    B, C_in, H, W = x_nchw.shape
    C_feat = conv_w.shape[1]
    n_out = thr_w.shape[1]
    hw = H * W

    # NCHW -> NHWC and wrapper-side im2col (cheap XLA glue at these shapes;
    # moves all window-gather shuffles out of the kernel's critical path).
    x_nhwc = jnp.transpose(x_nchw, (0, 2, 3, 1))
    patches = _im2col_nhwc(x_nhwc)                     # (B*HW, 9*C_in) = (512, 36)

    kernel = make_fused_kernel(B, hw, C_feat)
    probs = pl.pallas_call(
        kernel,
        out_shape=jax.ShapeDtypeStruct((B, n_out), jnp.float32),
        in_specs=[_full_spec(patches.shape),
                  _full_spec(conv_w.shape),
                  _full_spec(conv_b.shape),
                  _full_spec(thr_w.shape),
                  _full_spec(thr_b.shape)],
        out_specs=_full_spec((B, n_out)),
    )(patches, conv_w, conv_b, thr_w, thr_b)
    return probs


def init_params(key, c_in=4, c_feat=32, num_classes=5):
    k1, k2, k3, k4 = jax.random.split(key, 4)
    kh = kw = 3
    conv_w = jax.random.normal(k1, (kh * kw * c_in, c_feat), jnp.float32) * 0.1
    conv_b = jax.random.normal(k2, (1, c_feat), jnp.float32) * 0.01
    thr_w = jax.random.normal(k3, (c_feat, num_classes - 1), jnp.float32) * 0.1
    thr_b = jax.random.normal(k4, (1, num_classes - 1), jnp.float32) * 0.01
    return {"conv_w": conv_w, "conv_b": conv_b, "thr_w": thr_w, "thr_b": thr_b}


# ----------------------------------------------------------------------------
# Pure-JAX reference (same math) for a correctness check.
# ----------------------------------------------------------------------------
def _reference_forward(x_nchw, params):
    x_nhwc = jnp.transpose(x_nchw, (0, 2, 3, 1))
    patches = _im2col_nhwc(x_nhwc)
    feat = jnp.maximum(patches @ params["conv_w"] + params["conv_b"], 0.0)
    B, _, H, W = x_nchw.shape
    feat = feat.reshape(B, H * W, -1).mean(axis=1)
    logits = feat @ params["thr_w"] + params["thr_b"]
    return jax.nn.sigmoid(logits)


if __name__ == "__main__":
    key = jax.random.PRNGKey(0)
    kx, kp = jax.random.split(key)

    B, C_in, H, W = 2, 4, 16, 16
    num_classes = 5
    x = jax.random.normal(kx, (B, C_in, H, W), jnp.float32)   # NCHW, like PyTorch
    params = init_params(kp, c_in=C_in, c_feat=32, num_classes=num_classes)

    out = jax.block_until_ready(ordinal_regression_forward(x, params))
    ref = jax.block_until_ready(_reference_forward(x, params))

    assert out.shape == (B, num_classes - 1)
    assert jnp.max(jnp.abs(out - ref)) < 1e-4, "mismatch vs reference"

    print("KERNEL_OK")
</pallas_src>

<mosaic_0001>
module attributes {stable_mosaic.version = 11 : i64} {
  func.func @kernel(%arg0: memref<512x36xf32, #tpu.memory_space<vmem>>, %arg1: memref<36x32xf32, #tpu.memory_space<vmem>>, %arg2: memref<1x32xf32, #tpu.memory_space<vmem>>, %arg3: memref<32x4xf32, #tpu.memory_space<vmem>>, %arg4: memref<1x4xf32, #tpu.memory_space<vmem>>, %arg5: memref<2x4xf32, #tpu.memory_space<vmem>>) attributes {dimension_semantics = [], scalar_prefetch = 0 : i64, scratch_operands = 0 : i64, tpu.core_type = #tpu.core_type<tc>} {
    %c0 = arith.constant 0 : index
    %c0_0 = arith.constant 0 : index
    %0 = vector.load %arg0[%c0, %c0_0] : memref<512x36xf32, #tpu.memory_space<vmem>>, vector<512x36xf32>
    %c0_1 = arith.constant 0 : index
    %c0_2 = arith.constant 0 : index
    %1 = vector.load %arg1[%c0_1, %c0_2] : memref<36x32xf32, #tpu.memory_space<vmem>>, vector<36x32xf32>
    %cst = arith.constant dense<0.000000e+00> : vector<512x32xf32>
    %2 = tpu.matmul %0, %1, %cst {dimension_numbers = #tpu.dot_dimension_numbers<[1], [0], [0], [1], [0, 0, 1, 1], [], []>} : vector<512x36xf32>, vector<36x32xf32>, vector<512x32xf32> -> vector<512x32xf32>
    %c0_3 = arith.constant 0 : index
    %c0_4 = arith.constant 0 : index
    %3 = vector.load %arg2[%c0_3, %c0_4] : memref<1x32xf32, #tpu.memory_space<vmem>>, vector<1x32xf32>
    %4 = vector.broadcast %3 : vector<1x32xf32> to vector<512x32xf32>
    %5 = arith.addf %2, %4 : vector<512x32xf32>
    %cst_5 = arith.constant 0.000000e+00 : f32
    %6 = vector.broadcast %cst_5 : f32 to vector<512x32xf32>
    %7 = arith.maximumf %5, %6 : vector<512x32xf32>
    %8 = vector.shape_cast %7 : vector<512x32xf32> to vector<2x256x32xf32>
    %cst_6 = arith.constant dense<0.000000e+00> : vector<2x32xf32>
    %9 = vector.multi_reduction <add>, %8, %cst_6 [1] : vector<2x256x32xf32> to vector<2x32xf32>
    %cst_7 = arith.constant 2.560000e+02 : f32
    %10 = vector.broadcast %cst_7 : f32 to vector<2x32xf32>
    %11 = arith.divf %9, %10 : vector<2x32xf32>
    %c0_8 = arith.constant 0 : index
    %c0_9 = arith.constant 0 : index
    %12 = vector.load %arg3[%c0_8, %c0_9] : memref<32x4xf32, #tpu.memory_space<vmem>>, vector<32x4xf32>
    %cst_10 = arith.constant dense<0.000000e+00> : vector<2x4xf32>
    %13 = tpu.matmul %11, %12, %cst_10 {dimension_numbers = #tpu.dot_dimension_numbers<[1], [0], [0], [1], [0, 0, 1, 1], [], []>} : vector<2x32xf32>, vector<32x4xf32>, vector<2x4xf32> -> vector<2x4xf32>
    %c0_11 = arith.constant 0 : index
    %c0_12 = arith.constant 0 : index
    %14 = vector.load %arg4[%c0_11, %c0_12] : memref<1x4xf32, #tpu.memory_space<vmem>>, vector<1x4xf32>
    %15 = vector.broadcast %14 : vector<1x4xf32> to vector<2x4xf32>
    %16 = arith.addf %13, %15 : vector<2x4xf32>
    %17 = arith.negf %16 : vector<2x4xf32>
    %18 = math.exp %17 : vector<2x4xf32>
    %cst_13 = arith.constant 1.000000e+00 : f32
    %19 = vector.broadcast %cst_13 : f32 to vector<2x4xf32>
    %20 = arith.addf %19, %18 : vector<2x4xf32>
    %21 = arith.divf %19, %20 : vector<2x4xf32>
    %c0_14 = arith.constant 0 : index
    %c0_15 = arith.constant 0 : index
    %22 = vector.load %arg5[%c0_14, %c0_15] : memref<2x4xf32, #tpu.memory_space<vmem>>, vector<2x4xf32>
    tpu.vector_store %arg5[%c0_14, %c0_15], %21 {strides = array<i32>} : memref<2x4xf32, #tpu.memory_space<vmem>>, vector<2x4xf32>,
    return
  }
}

</mosaic_0001>

<bundles_post_ra>
// kernel: ordinal_regression_forward.1
= control target key start
LH: loop header
LB: loop body
LE: loop exit
PB: predicated region body
PF: predicated region fallthrough
CT: control target
= control target key end

     0   :  { %vm290_vm0 = vcmask 1043456   ;;  %vm97_vm1 = vcmask 293888   ;;  %s1807_s0 = inlined_call_operand.vmem [shape: f32[512,36], index: 0, kind: input, shape index: {}]   ;;  %s1808_s1 = inlined_call_operand.vmem [shape: f32[36,32], index: 1, kind: input, shape index: {}]   ;;  %s1809_s2 = inlined_call_operand.vmem [shape: f32[1,32], index: 2, kind: input, shape index: {}]   ;;  %s1810_s3 = inlined_call_operand.vmem [shape: f32[32,4], index: 3, kind: input, shape index: {}]   ;;  %s1811_s4 = inlined_call_operand.vmem [shape: f32[1,4], index: 4, kind: input, shape index: {}]   ;;  %s1812_s5 = inlined_call_operand.hbm [shape: f32[2,4], index: 5, kind: output, shape index: {}]  }
   0x1   :  { %v89_v0 = vld [vmem:[%s1808_s1 + $0x20] sm:$0xf]  ;;  %v88_v1 = vld [vmem:[%s1808_s1 + $0x18] sm:$0xff]  ;;  %v87_v3 = vld [vmem:[%s1808_s1 + $0x10] sm:$0xff] }
   0x2   :  { %1137 = vmatprep.subr.msk.mxu0 %vm290_vm0, %v89_v0  ;;  %v21_v2 = vld [vmem:[%s1807_s0] sm:$0xff]  ;;  %1254 = vmatprep.subr.msk.mxu1 %vm290_vm0, %v89_v0  ;;  %v86_v4 = vld [vmem:[%s1808_s1 + $0x8] sm:$0xff]  ;;  %v23_v7 = vld [vmem:[%s1807_s0 + $0x10] sm:$0xff] }
   0x3   :  { %1138 = vmatpush3.msk.msra.mxu0 %vm290_vm0, %v89_v0  ;;  %1147 = vmatprep.mubr.msk.f32.mxu0 %vm97_vm1, %v21_v2  ;;  %v85_v5 = vld [vmem:[%s1808_s1] sm:$0xff]  ;;  %v22_v6 = vld [vmem:[%s1807_s0 + $0x8] sm:$0xff]  ;;  %v24_v8 = vld [vmem:[%s1807_s0 + $0x18] sm:$0xff] }
   0x4   :  { %1139 = vmatprep.subr.mxu0 %v88_v1  ;;  %1259 = vmatpush3.msk.msra.mxu1 %vm290_vm0, %v89_v0  ;;  %v55_v9 = vld [vmem:[%s1807_s0 + $0x110] sm:$0xff]  ;;  %v25_v10 = vld [vmem:[%s1807_s0 + $0x20] sm:$0xff]  ;;  %v56_v11 = vld [vmem:[%s1807_s0 + $0x118] sm:$0xff] }
   0x5   :  { %1140 = vmatpush3.msra.mxu0 %v88_v1  ;;  %1255 = vmatprep.subr.mxu1 %v88_v1  ;;  %v57_v12 = vld [vmem:[%s1807_s0 + $0x120] sm:$0xff]  ;;  %v58_v13 = vld [vmem:[%s1807_s0 + $0x128] sm:$0xff]  ;;  %v59_v15 = vld [vmem:[%s1807_s0 + $0x130] sm:$0xff] }
   0x6   :  { %1141 = vmatprep.subr.mxu0 %v87_v3  ;;  %1260 = vmatpush3.msra.mxu1 %v88_v1  ;;  %v26_v14 = vld [vmem:[%s1807_s0 + $0x28] sm:$0xff]  ;;  %v27_v16 = vld [vmem:[%s1807_s0 + $0x30] sm:$0xff]  ;;  %v60_v17 = vld [vmem:[%s1807_s0 + $0x138] sm:$0xff] }
   0x7   :  { %1142 = vmatpush3.msra.mxu0 %v87_v3  ;;  %1256 = vmatprep.subr.mxu1 %v87_v3  ;;  %v28_v18 = vld [vmem:[%s1807_s0 + $0x38] sm:$0xff]  ;;  %v61_v19 = vld [vmem:[%s1807_s0 + $0x140] sm:$0xff]  ;;  %v62_v21 = vld [vmem:[%s1807_s0 + $0x148] sm:$0xff] }
   0x8   :  { %1143 = vmatprep.subr.mxu0 %v86_v4  ;;  %1261 = vmatpush3.msra.mxu1 %v87_v3  ;;  %v29_v20 = vld [vmem:[%s1807_s0 + $0x40] sm:$0xff] }
   0x9   :  { %1144 = vmatpush3.msra.mxu0 %v86_v4  ;;  %1257 = vmatprep.subr.mxu1 %v86_v4 }
   0xa   :  { %1145 = vmatprep.subr.mxu0 %v85_v5  ;;  %1262 = vmatpush3.msra.mxu1 %v86_v4 }
   0xb   :  { %1146 = vmatpush3.msra.mxu0 %v85_v5  ;;  %1258 = vmatprep.subr.mxu1 %v85_v5 }
   0xc   :  { %1148 = vmatmul.mubr.msk.f32.vlgmr.msra.gmra.mxu0 %vm97_vm1, %v22_v6  ;;  %1263 = vmatpush3.msra.mxu1 %v85_v5 }
   0xd   :  { %1150 = vmatprep.mubr.msk.f32.mxu0 %vm97_vm1, %v23_v7  ;;  %1198 = vmatprep.mubr.msk.f32.mxu1 %vm97_vm1, %v55_v9 }
   0xe   :  { %1199 = vmatmul.mubr.msk.f32.vlgmr.msra.gmra.mxu1 %vm97_vm1, %v56_v11 }
   0xf   :  { %1201 = vmatprep.mubr.msk.f32.mxu1 %vm97_vm1, %v57_v12 }
  0x10   :  { %1151 = vmatmul.mubr.msk.f32.gmra.mxu0 %vm97_vm1, %v24_v8 }
  0x11   :  { %1153 = vmatprep.mubr.msk.f32.mxu0 %vm97_vm1, %v25_v10 }
  0x12   :  { %1202 = vmatmul.mubr.msk.f32.gmra.mxu1 %vm97_vm1, %v58_v13 }
  0x13   :  { %1204 = vmatprep.mubr.msk.f32.mxu1 %vm97_vm1, %v59_v15 }
  0x14   :  { %1154 = vmatmul.mubr.msk.f32.gmra.mxu0 %vm97_vm1, %v26_v14 }
  0x15   :  { %1156 = vmatprep.mubr.msk.f32.mxu0 %vm97_vm1, %v27_v16 }
  0x16   :  { %1205 = vmatmul.mubr.msk.f32.gmra.mxu1 %vm97_vm1, %v60_v17 }
  0x17   :  { %1207 = vmatprep.mubr.msk.f32.mxu1 %vm97_vm1, %v61_v19 }
  0x18   :  { %1157 = vmatmul.mubr.msk.f32.gmra.mxu0 %vm97_vm1, %v28_v18 }
  0x19   :  { %10 = vsyncpa [#allocation3], 0  ;;  %1159 = vmatprep.mubr.msk.f32.mxu0 %vm97_vm1, %v29_v20  ;;  %v30_v22 = vld [vmem:[%s1807_s0 + $0x48] sm:$0xff]  ;;  %v63_v23 = vld [vmem:[%s1807_s0 + $0x150] sm:$0xff]  ;;  %v1293_v6 = vmov 0.0   ;;  %vm743_vm2 = vcmask 261120  }
  0x1a   :  { %v31_v24 = vld [vmem:[%s1807_s0 + $0x50] sm:$0xff]  ;;  %1208 = vmatmul.mubr.msk.f32.gmra.mxu1 %vm97_vm1, %v62_v21  ;;  %v64_v25 = vld [vmem:[%s1807_s0 + $0x158] sm:$0xff]  ;;  %v65_v27 = vld [vmem:[%s1807_s0 + $0x160] sm:$0xff]  ;;  %1243 = vmatprep.subr.mxu1 %v1293_v6  ;;  %vm1294_vm3 = vmmov 0   ;;  %vm898_vm4 = vcmask 1041409   ;;  %s1295_s9 = smov [#allocation2]  }
  0x1b   :  { %1210 = vmatprep.mubr.msk.f32.mxu1 %vm97_vm1, %v63_v23  ;;  %v32_v26 = vld [vmem:[%s1807_s0 + $0x58] sm:$0xff]  ;;  %v33_v28 = vld [vmem:[%s1807_s0 + $0x60] sm:$0xff]  ;;  %v66_v29 = vld [vmem:[%s1807_s0 + $0x168] sm:$0xff]  ;;  %s986_s10 = sshll.u32 %s1295_s9, 4  ;;  %vm978_vm5 = vcmask 25600   ;;  %s987_s10 = int_to_ptr.vmem [resolvable:$true] %s986_s10 }
  0x1c   :  { %1160 = vmatmul.mubr.msk.f32.gmra.mxu0 %vm97_vm1, %v30_v22  ;;  %v34_v30 = vld [vmem:[%s1807_s0 + $0x68] sm:$0xff]  ;;  %v67_v31 = vld [vmem:[%s1807_s0 + $0x170] sm:$0xff]  ;;  %v68_v33 = vld [vmem:[%s1807_s0 + $0x178] sm:$0xff]  ;;  %s1271_s11 = scalar_lea.vmem %s987_s10, 32  ;;  %p1276_p1 = scmp.lt.s32.totalorder %s987_s10, %s987_s10 }
  0x1d   :  { %1162 = vmatprep.mubr.msk.f32.mxu0 %vm97_vm1, %v31_v24  ;;  %v35_v32 = vld [vmem:[%s1807_s0 + $0x70] sm:$0xff]  ;;  %v36_v34 = vld [vmem:[%s1807_s0 + $0x78] sm:$0xff]  ;;  %v69_v35 = vld [vmem:[%s1807_s0 + $0x180] sm:$0xff]  ;;  %p1272_p0 = scmp.ne.s32.totalorder %s987_s10, %s1271_s11  ;;  %p1277_p2 = scmp.lt.s32.totalorder %s1271_s11, %s1271_s11 }
  0x1e   :  { %1211 = vmatmul.mubr.msk.f32.gmra.mxu1 %vm97_vm1, %v64_v25  ;;  %v37_v36 = vld [vmem:[%s1807_s0 + $0x80] sm:$0xff]  ;;  %v70_v37 = vld [vmem:[%s1807_s0 + $0x188] sm:$0xff]  ;;  %v71_v39 = vld [vmem:[%s1807_s0 + $0x190] sm:$0xff] }
  0x1f   :  { %1213 = vmatprep.mubr.msk.f32.mxu1 %vm97_vm1, %v65_v27  ;;  %v38_v38 = vld [vmem:[%s1807_s0 + $0x88] sm:$0xff]  ;;  %v39_v40 = vld [vmem:[%s1807_s0 + $0x90] sm:$0xff]  ;;  %v72_v41 = vld [vmem:[%s1807_s0 + $0x198] sm:$0xff]  ;;  %p1278_p3 = por %p1277_p2, %p1276_p1 }
  0x20   :  { %1163 = vmatmul.mubr.msk.f32.gmra.mxu0 %vm97_vm1, %v32_v26  ;;  %v40_v42 = vld [vmem:[%s1807_s0 + $0x98] sm:$0xff]  ;;  %v73_v43 = vld [vmem:[%s1807_s0 + $0x1a0] sm:$0xff]  ;;  %v74_v45 = vld [vmem:[%s1807_s0 + $0x1a8] sm:$0xff] }
  0x21   :  { %1165 = vmatprep.mubr.msk.f32.mxu0 %vm97_vm1, %v33_v28  ;;  %v41_v44 = vld [vmem:[%s1807_s0 + $0xa0] sm:$0xff]  ;;  %v42_v46 = vld [vmem:[%s1807_s0 + $0xa8] sm:$0xff]  ;;  %v75_v47 = vld [vmem:[%s1807_s0 + $0x1b0] sm:$0xff]  ;;  %p1279_p4 = pnand %p1278_p3, %p1272_p0 }
  0x22   :  { %1214 = vmatmul.mubr.msk.f32.gmra.mxu1 %vm97_vm1, %v66_v29  ;;  %v43_v48 = vld [vmem:[%s1807_s0 + $0xb0] sm:$0xff]  ;;  %v76_v49 = vld [vmem:[%s1807_s0 + $0x1b8] sm:$0xff]  ;;  %v77_v51 = vld [vmem:[%s1807_s0 + $0x1c0] sm:$0xff] }
  0x23   :  { %1216 = vmatprep.mubr.msk.f32.mxu1 %vm97_vm1, %v67_v31  ;;  %v44_v50 = vld [vmem:[%s1807_s0 + $0xb8] sm:$0xff]  ;;  %v45_v52 = vld [vmem:[%s1807_s0 + $0xc0] sm:$0xff]  ;;  %v78_v53 = vld [vmem:[%s1807_s0 + $0x1c8] sm:$0xff] }
  0x24   :  { %1166 = vmatmul.mubr.msk.f32.gmra.mxu0 %vm97_vm1, %v34_v30  ;;  %v46_v54 = vld [vmem:[%s1807_s0 + $0xc8] sm:$0xff]  ;;  %v79_v55 = vld [vmem:[%s1807_s0 + $0x1d0] sm:$0xff]  ;;  %v80_v57 = vld [vmem:[%s1807_s0 + $0x1d8] sm:$0xff] }
  0x25   :  { %1168 = vmatprep.mubr.msk.f32.mxu0 %vm97_vm1, %v35_v32  ;;  %v47_v56 = vld [vmem:[%s1807_s0 + $0xd0] sm:$0xff]  ;;  %v48_v58 = vld [vmem:[%s1807_s0 + $0xd8] sm:$0xff]  ;;  %v81_v59 = vld [vmem:[%s1807_s0 + $0x1e0] sm:$0xff] }
  0x26   :  { %1217 = vmatmul.mubr.msk.f32.gmra.mxu1 %vm97_vm1, %v68_v33  ;;  %v49_v60 = vld [vmem:[%s1807_s0 + $0xe0] sm:$0xff]  ;;  %v82_v61 = vld [vmem:[%s1807_s0 + $0x1e8] sm:$0xff]  ;;  %v83_v63 = vld [vmem:[%s1807_s0 + $0x1f0] sm:$0xff] }
  0x27   :  { %1219 = vmatprep.mubr.msk.f32.mxu1 %vm97_vm1, %v69_v35  ;;  %v50_v62 = vld [vmem:[%s1807_s0 + $0xe8] sm:$0xff]  ;;  %v51_v0 = vld [vmem:[%s1807_s0 + $0xf0] sm:$0xff]  ;;  %v84_v1 = vld [vmem:[%s1807_s0 + $0x1f8] sm:$0xff] }
  0x28   :  { %1169 = vmatmul.mubr.msk.f32.gmra.mxu0 %vm97_vm1, %v36_v34  ;;  %v52_v2 = vld [vmem:[%s1807_s0 + $0xf8] sm:$0xff]  ;;  %v53_v3 = vld [vmem:[%s1807_s0 + $0x100] sm:$0xff]  ;;  %v54_v4 = vld [vmem:[%s1807_s0 + $0x108] sm:$0xff] }
  0x29   :  { %1171 = vmatprep.mubr.msk.f32.mxu0 %vm97_vm1, %v37_v36  ;;  %v888_v5 = vld [vmem:[%s1810_s3 + $0x18] sm:$0xff]  ;;  %v887_v7 = vld [vmem:[%s1810_s3 + $0x10] sm:$0xff]  ;;  %v1606_v8 = vld [vmem:[%s1809_s2] ss:$0 sm:$0xff] }
  0x2a   :  { %1220 = vmatmul.mubr.msk.f32.gmra.mxu1 %vm97_vm1, %v70_v37  ;;  %v886_v9 = vld [vmem:[%s1810_s3 + $0x8] sm:$0xff] }
  0x2b   :  { %1222 = vmatprep.mubr.msk.f32.mxu1 %vm97_vm1, %v71_v39  ;;  %1244 = vmatpush3.msra.mxu1 %v888_v5 }
  0x2c   :  { %1172 = vmatmul.mubr.msk.f32.gmra.mxu0 %vm97_vm1, %v38_v38  ;;  %1245 = vmatprep.subr.mxu1 %v1293_v6 }
  0x2d   :  { %1174 = vmatprep.mubr.msk.f32.mxu0 %vm97_vm1, %v39_v40  ;;  %1246 = vmatpush3.msra.mxu1 %v887_v7 }
  0x2e   :  { %1223 = vmatmul.mubr.msk.f32.gmra.mxu1 %vm97_vm1, %v72_v41  ;;  %1247 = vmatprep.subr.mxu1 %v1293_v6 }
  0x2f   :  { %1225 = vmatprep.mubr.msk.f32.mxu1 %vm97_vm1, %v73_v43  ;;  %1248 = vmatpush3.msra.mxu1 %v886_v9 }
  0x30   :  { %1175 = vmatmul.mubr.msk.f32.gmra.mxu0 %vm97_vm1, %v40_v42  ;;  %1249 = vmatprep.subr.mxu1 %v1293_v6 }
  0x31   :  { %1177 = vmatprep.mubr.msk.f32.mxu0 %vm97_vm1, %v41_v44 }
  0x32   :  { %1226 = vmatmul.mubr.msk.f32.gmra.mxu1 %vm97_vm1, %v74_v45 }
  0x33   :  { %1228 = vmatprep.mubr.msk.f32.mxu1 %vm97_vm1, %v75_v47 }
  0x34   :  { %1178 = vmatmul.mubr.msk.f32.gmra.mxu0 %vm97_vm1, %v42_v46 }
  0x35   :  { %1180 = vmatprep.mubr.msk.f32.mxu0 %vm97_vm1, %v43_v48 }
  0x36   :  { %1229 = vmatmul.mubr.msk.f32.gmra.mxu1 %vm97_vm1, %v76_v49 }
  0x37   :  { %1231 = vmatprep.mubr.msk.f32.mxu1 %vm97_vm1, %v77_v51 }
  0x38   :  { %1181 = vmatmul.mubr.msk.f32.gmra.mxu0 %vm97_vm1, %v44_v50 }
  0x39   :  { %1183 = vmatprep.mubr.msk.f32.mxu0 %vm97_vm1, %v45_v52 }
  0x3a   :  { %1232 = vmatmul.mubr.msk.f32.gmra.mxu1 %vm97_vm1, %v78_v53  ;;  %v885_v53 = vld [vmem:[%s1810_s3] sm:$0xff] }
  0x3b   :  { %1234 = vmatprep.mubr.msk.f32.mxu1 %vm97_vm1, %v79_v55  ;;  %1250 = vmatpush3.msra.mxu1 %v885_v53 }
  0x3c   :  { %1184 = vmatmul.mubr.msk.f32.gmra.mxu0 %vm97_vm1, %v46_v54 }
  0x3d   :  { %1186 = vmatprep.mubr.msk.f32.mxu0 %vm97_vm1, %v47_v56 }
  0x3e   :  { %1235 = vmatmul.mubr.msk.f32.gmra.mxu1 %vm97_vm1, %v80_v57 }
  0x3f   :  { %1237 = vmatprep.mubr.msk.f32.mxu1 %vm97_vm1, %v81_v59 }
  0x40   :  { %1187 = vmatmul.mubr.msk.f32.gmra.mxu0 %vm97_vm1, %v48_v58 }
  0x41   :  { %1189 = vmatprep.mubr.msk.f32.mxu0 %vm97_vm1, %v49_v60 }
  0x42   :  { %1238 = vmatmul.mubr.msk.f32.gmra.mxu1 %vm97_vm1, %v82_v61 }
  0x43   :  { %1240 = vmatprep.mubr.msk.f32.mxu1 %vm97_vm1, %v83_v63 }
  0x44   :  { %1190 = vmatmul.mubr.msk.f32.gmra.mxu0 %vm97_vm1, %v50_v62 }
  0x45   :  { %1192 = vmatprep.mubr.msk.f32.mxu0 %vm97_vm1, %v51_v0 }
  0x46   :  { %1241 = vmatmul.mubr.msk.f32.gmra.mxu1 %vm97_vm1, %v84_v1 }
  0x47   :  { %1251 = vmatprep.mubr.msk.f32.mxu1 %vm1294_vm3, %v1293_v6 }
  0x48   :  { %1193 = vmatmul.mubr.msk.f32.gmra.mxu0 %vm97_vm1, %v52_v2 }
  0x49   :  { %1195 = vmatprep.mubr.msk.f32.mxu0 %vm97_vm1, %v53_v3 }
  0x4c   :  { %1196 = vmatmul.mubr.msk.f32.gmra.mxu0 %vm97_vm1, %v54_v4 }
  0xcc   :  { %v1149_v10 = vpop.f32.mrf.mxu0 }
  0xcd   :  { %v366_v11 = vadd.f32 %v1149_v10, %v1606_v8 }
  0xce   :  { %v360_v12 = vpop.f32.mrf.mxu0  ;;  %v1613_v15 = vpop.f32.mrf.mxu1 }
  0xcf   :  { %v680_v13 = vmax.f32 %v366_v11, 0.0  ;;  %v361_v14 = vadd.f32 %v1606_v8, %v360_v12 }
  0xd0   :  { %v1152_v16 = vpop.f32.mrf.mxu0  ;;  %v1616_v20 = vpop.f32.mrf.mxu1 }
  0xd1   :  { %v679_v17 = vmax.f32 %v361_v14, 0.0  ;;  %v376_v18 = vadd.f32 %v1152_v16, %v1606_v8  ;;  %v745_v21 = vsel %vm743_vm2, %v680_v13, 0.0 }
  0xd2   :  { %v370_v19 = vpop.f32.mrf.mxu0  ;;  %v1622_v30 = vpop.f32.mrf.mxu1 }
  0xd3   :  { %v744_v22 = vsel %vm743_vm2, %v679_v17, 0.0  ;;  %v371_v23 = vadd.f32 %v1606_v8, %v370_v19  ;;  %v682_v26 = vmax.f32 %v376_v18, 0.0 }
  0xd4   :  { %v746_v24 = vadd.f32 %v745_v21, %v744_v22  ;;  %v1155_v25 = vpop.f32.mrf.mxu0  ;;  %v1628_v41 = vpop.f32.mrf.mxu1 }
  0xd5   :  { %v681_v27 = vmax.f32 %v371_v23, 0.0  ;;  %v386_v28 = vadd.f32 %v1155_v25, %v1606_v8  ;;  %v749_v35 = vsel %vm743_vm2, %v682_v26, 0.0 }
  0xd6   :  { %v380_v29 = vpop.f32.mrf.mxu0  ;;  %v1634_v52 = vpop.f32.mrf.mxu1 }
  0xd7   :  { %v747_v31 = vsel %vm743_vm2, %v681_v27, 0.0  ;;  %v381_v32 = vadd.f32 %v1606_v8, %v380_v29  ;;  %v684_v36 = vmax.f32 %v386_v28, 0.0 }
  0xd8   :  { %v748_v33 = vadd.f32 %v747_v31, %v746_v24  ;;  %v1158_v34 = vpop.f32.mrf.mxu0  ;;  %v1643_v0 = vpop.f32.mrf.mxu1 }
  0xd9   :  { %v683_v37 = vmax.f32 %v381_v32, 0.0  ;;  %v396_v38 = vadd.f32 %v1158_v34, %v1606_v8  ;;  %v753_v46 = vsel %vm743_vm2, %v684_v36, 0.0 }
  0xda   :  { %v750_v39 = vadd.f32 %v749_v35, %v748_v33  ;;  %v390_v40 = vpop.f32.mrf.mxu0  ;;  %v1649_v12 = vpop.f32.mrf.mxu1 }
  0xdb   :  { %v751_v42 = vsel %vm743_vm2, %v683_v37, 0.0  ;;  %v391_v43 = vadd.f32 %v1606_v8, %v390_v40  ;;  %v686_v47 = vmax.f32 %v396_v38, 0.0 }
  0xdc   :  { %v752_v44 = vadd.f32 %v751_v42, %v750_v39  ;;  %v1161_v45 = vpop.f32.mrf.mxu0  ;;  %v1655_v25 = vpop.f32.mrf.mxu1 }
  0xdd   :  { %v685_v48 = vmax.f32 %v391_v43, 0.0  ;;  %v406_v49 = vadd.f32 %v1161_v45, %v1606_v8  ;;  %v757_v58 = vsel %vm743_vm2, %v686_v47, 0.0 }
  0xde   :  { %v754_v50 = vadd.f32 %v753_v46, %v752_v44  ;;  %v400_v51 = vpop.f32.mrf.mxu0  ;;  %v1661_v37 = vpop.f32.mrf.mxu1 }
  0xdf   :  { %v755_v54 = vsel %vm743_vm2, %v685_v48, 0.0  ;;  %v401_v55 = vadd.f32 %v1606_v8, %v400_v51  ;;  %v688_v59 = vmax.f32 %v406_v49, 0.0 }
  0xe0   :  { %v756_v56 = vadd.f32 %v755_v54, %v754_v50  ;;  %v1164_v57 = vpop.f32.mrf.mxu0  ;;  %v1667_v49 = vpop.f32.mrf.mxu1 }
  0xe1   :  { %v687_v60 = vmax.f32 %v401_v55, 0.0  ;;  %v416_v61 = vadd.f32 %v1164_v57, %v1606_v8  ;;  %v761_v5 = vsel %vm743_vm2, %v688_v59, 0.0 }
  0xe2   :  { %v758_v62 = vadd.f32 %v757_v58, %v756_v56  ;;  %v410_v63 = vpop.f32.mrf.mxu0 }
  0xe3   :  { %v759_v1 = vsel %vm743_vm2, %v687_v60, 0.0  ;;  %v411_v2 = vadd.f32 %v1606_v8, %v410_v63  ;;  %v690_v7 = vmax.f32 %v416_v61, 0.0  ;;  %v1673_v61 = vpop.f32.mrf.mxu1 }
  0xe4   :  { %v760_v3 = vadd.f32 %v759_v1, %v758_v62  ;;  %v1167_v4 = vpop.f32.mrf.mxu0 }
  0xe5   :  { %v689_v6 = vmax.f32 %v411_v2, 0.0  ;;  %v426_v9 = vadd.f32 %v1167_v4, %v1606_v8  ;;  %v765_v18 = vsel %vm743_vm2, %v690_v7, 0.0 }
  0xe6   :  { %v762_v10 = vadd.f32 %v761_v5, %v760_v3  ;;  %v420_v11 = vpop.f32.mrf.mxu0 }
  0xe7   :  { %v763_v13 = vsel %vm743_vm2, %v689_v6, 0.0  ;;  %v421_v14 = vadd.f32 %v1606_v8, %v420_v11  ;;  %v692_v19 = vmax.f32 %v426_v9, 0.0 }
  0xe8   :  { %v764_v16 = vadd.f32 %v763_v13, %v762_v10  ;;  %v1170_v17 = vpop.f32.mrf.mxu0  ;;  %v1679_v10 = vpop.f32.mrf.mxu1 }
  0xe9   :  { %v691_v21 = vmax.f32 %v421_v14, 0.0  ;;  %v436_v22 = vadd.f32 %v1170_v17, %v1606_v8  ;;  %v769_v31 = vsel %vm743_vm2, %v692_v19, 0.0 }
  0xea   :  { %v766_v23 = vadd.f32 %v765_v18, %v764_v16  ;;  %v430_v24 = vpop.f32.mrf.mxu0 }
  0xeb   :  { %v767_v26 = vsel %vm743_vm2, %v691_v21, 0.0  ;;  %v431_v27 = vadd.f32 %v1606_v8, %v430_v24  ;;  %v694_v32 = vmax.f32 %v436_v22, 0.0  ;;  %v1685_v24 = vpop.f32.mrf.mxu1 }
  0xec   :  { %v768_v28 = vadd.f32 %v767_v26, %v766_v23  ;;  %v1173_v29 = vpop.f32.mrf.mxu0 }
  0xed   :  { %v693_v33 = vmax.f32 %v431_v27, 0.0  ;;  %v446_v34 = vadd.f32 %v1173_v29, %v1606_v8  ;;  %v773_v43 = vsel %vm743_vm2, %v694_v32, 0.0 }
  0xee   :  { %v770_v35 = vadd.f32 %v769_v31, %v768_v28  ;;  %v440_v36 = vpop.f32.mrf.mxu0 }
  0xef   :  { %v771_v38 = vsel %vm743_vm2, %v693_v33, 0.0  ;;  %v441_v39 = vadd.f32 %v1606_v8, %v440_v36  ;;  %v696_v44 = vmax.f32 %v446_v34, 0.0 }
  0xf0   :  { %v772_v40 = vadd.f32 %v771_v38, %v770_v35  ;;  %v1176_v42 = vpop.f32.mrf.mxu0  ;;  %v1691_v38 = vpop.f32.mrf.mxu1 }
  0xf1   :  { %v695_v45 = vmax.f32 %v441_v39, 0.0  ;;  %v456_v46 = vadd.f32 %v1176_v42, %v1606_v8  ;;  %v777_v55 = vsel %vm743_vm2, %v696_v44, 0.0 }
  0xf2   :  { %v774_v47 = vadd.f32 %v773_v43, %v772_v40  ;;  %v450_v48 = vpop.f32.mrf.mxu0 }
  0xf3   :  { %v775_v50 = vsel %vm743_vm2, %v695_v45, 0.0  ;;  %v451_v51 = vadd.f32 %v1606_v8, %v450_v48  ;;  %v698_v56 = vmax.f32 %v456_v46, 0.0 }
  0xf4   :  { %v776_v53 = vadd.f32 %v775_v50, %v774_v47  ;;  %v1179_v54 = vpop.f32.mrf.mxu0 }
  0xf5   :  { %v697_v57 = vmax.f32 %v451_v51, 0.0  ;;  %v466_v58 = vadd.f32 %v1179_v54, %v1606_v8  ;;  %v781_v3 = vsel %vm743_vm2, %v698_v56, 0.0  ;;  %v1697_v51 = vpop.f32.mrf.mxu1 }
  0xf6   :  { %v778_v59 = vadd.f32 %v777_v55, %v776_v53  ;;  %v460_v60 = vpop.f32.mrf.mxu0 }
  0xf7   :  { %v779_v62 = vsel %vm743_vm2, %v697_v57, 0.0  ;;  %v461_v63 = vadd.f32 %v1606_v8, %v460_v60  ;;  %v700_v4 = vmax.f32 %v466_v58, 0.0 }
  0xf8   :  { %v780_v1 = vadd.f32 %v779_v62, %v778_v59  ;;  %v1182_v2 = vpop.f32.mrf.mxu0 }
  0xf9   :  { %v699_v5 = vmax.f32 %v461_v63, 0.0  ;;  %v476_v7 = vadd.f32 %v1182_v2, %v1606_v8  ;;  %v785_v17 = vsel %vm743_vm2, %v700_v4, 0.0 }
  0xfa   :  { %v782_v6 = vadd.f32 %v781_v3, %v780_v1  ;;  %v470_v9 = vpop.f32.mrf.mxu0  ;;  %v1703_v1 = vpop.f32.mrf.mxu1 }
  0xfb   :  { %v783_v11 = vsel %vm743_vm2, %v699_v5, 0.0  ;;  %v471_v13 = vadd.f32 %v1606_v8, %v470_v9  ;;  %v702_v18 = vmax.f32 %v476_v7, 0.0  ;;  %v531_v7 = vadd.f32 %v1606_v8, %v1616_v20 }
  0xfc   :  { %v784_v14 = vadd.f32 %v783_v11, %v782_v6  ;;  %v1185_v16 = vpop.f32.mrf.mxu0 }
  0xfd   :  { %v701_v19 = vmax.f32 %v471_v13, 0.0  ;;  %v486_v21 = vadd.f32 %v1185_v16, %v1606_v8  ;;  %v789_v31 = vsel %vm743_vm2, %v702_v18, 0.0 }
  0xfe   :  { %v786_v22 = vadd.f32 %v785_v17, %v784_v14  ;;  %v480_v23 = vpop.f32.mrf.mxu0  ;;  %v1711_v17 = vpop.f32.mrf.mxu1 }
  0xff   :  { %v787_v26 = vsel %vm743_vm2, %v701_v19, 0.0  ;;  %v481_v27 = vadd.f32 %v1606_v8, %v480_v23  ;;  %v704_v32 = vmax.f32 %v486_v21, 0.0  ;;  %v536_v21 = vadd.f32 %v1613_v15, %v1606_v8 }
 0x100   :  { %v788_v28 = vadd.f32 %v787_v26, %v786_v22  ;;  %v1188_v29 = vpop.f32.mrf.mxu0  ;;  %v546_v15 = vadd.f32 %v1622_v30, %v1606_v8 }
 0x101   :  { %v703_v33 = vmax.f32 %v481_v27, 0.0  ;;  %v496_v34 = vadd.f32 %v1188_v29, %v1606_v8  ;;  %v793_v44 = vsel %vm743_vm2, %v704_v32, 0.0  ;;  %v713_v27 = vmax.f32 %v531_v7, 0.0 }
 0x102   :  { %v790_v35 = vadd.f32 %v789_v31, %v788_v28  ;;  %v490_v36 = vpop.f32.mrf.mxu0  ;;  %v541_v28 = vadd.f32 %v1606_v8, %v1628_v41  ;;  %v610_v31 = vpop.f32.mrf.mxu1 }
 0x103   :  { %v791_v39 = vsel %vm743_vm2, %v703_v33, 0.0  ;;  %v491_v40 = vadd.f32 %v1606_v8, %v490_v36  ;;  %v706_v45 = vmax.f32 %v496_v34, 0.0  ;;  %v714_v33 = vmax.f32 %v536_v21, 0.0 }
 0x104   :  { %v792_v42 = vadd.f32 %v791_v39, %v790_v35  ;;  %v1191_v43 = vpop.f32.mrf.mxu0  ;;  %v816_v36 = vsel %vm743_vm2, %v713_v27, 0.0  ;;  %v715_v39 = vmax.f32 %v541_v28, 0.0  ;;  %v1729_v41 = vpop.f32.mrf.mxu1  ;;  %v596_v21 = vadd.f32 %v1685_v24, %v1606_v8 }
 0x105   :  { %v705_v46 = vmax.f32 %v491_v40, 0.0  ;;  %v506_v47 = vadd.f32 %v1191_v43, %v1606_v8  ;;  %v797_v57 = vsel %vm743_vm2, %v706_v45, 0.0  ;;  %v551_v40 = vadd.f32 %v1606_v8, %v1643_v0 }
 0x106   :  { %v794_v48 = vadd.f32 %v793_v44, %v792_v42  ;;  %v500_v50 = vpop.f32.mrf.mxu0  ;;  %v818_v43 = vsel %vm743_vm2, %v714_v33, 0.0  ;;  %v716_v44 = vmax.f32 %v546_v15, 0.0  ;;  %v556_v45 = vadd.f32 %v1634_v52, %v1606_v8 }
 0x107   :  { %v795_v53 = vsel %vm743_vm2, %v705_v46, 0.0  ;;  %v501_v54 = vadd.f32 %v1606_v8, %v500_v50  ;;  %v708_v58 = vmax.f32 %v506_v47, 0.0  ;;  %v820_v47 = vsel %vm743_vm2, %v715_v39, 0.0 }
 0x108   :  { %v796_v55 = vadd.f32 %v795_v53, %v794_v48  ;;  %v1194_v56 = vpop.f32.mrf.mxu0  ;;  %v717_v30 = vmax.f32 %v551_v40, 0.0  ;;  %v561_v48 = vadd.f32 %v1606_v8, %v1655_v25  ;;  %v620_v53 = vpop.f32.mrf.mxu1  ;;  %v822_v0 = vsel %vm743_vm2, %v716_v44, 0.0 }
 0x109   :  { %v707_v59 = vmax.f32 %v501_v54, 0.0  ;;  %v516_v60 = vadd.f32 %v1194_v56, %v1606_v8  ;;  %v801_v6 = vsel %vm743_vm2, %v708_v58, 0.0  ;;  %v718_v54 = vmax.f32 %v556_v45, 0.0 }
 0x10a   :  { %v798_v62 = vadd.f32 %v797_v57, %v796_v55  ;;  %v510_v63 = vpop.f32.mrf.mxu0  ;;  %v566_v55 = vadd.f32 %v1649_v12, %v1606_v8  ;;  %v824_v57 = vsel %vm743_vm2, %v717_v30, 0.0  ;;  %v719_v58 = vmax.f32 %v561_v48, 0.0 }
 0x10b   :  { %v799_v2 = vsel %vm743_vm2, %v707_v59, 0.0  ;;  %v511_v3 = vadd.f32 %v1606_v8, %v510_v63  ;;  %v710_v9 = vmax.f32 %v516_v60, 0.0  ;;  %v571_v52 = vadd.f32 %v1606_v8, %v1667_v49  ;;  %v1230_v60 = vpop.f32.mrf.mxu1 }
 0x10c   :  { %v800_v4 = vadd.f32 %v799_v2, %v798_v62  ;;  %v1197_v5 = vpop.f32.mrf.mxu0  ;;  %v826_v62 = vsel %vm743_vm2, %v718_v54, 0.0  ;;  %v720_v25 = vmax.f32 %v566_v55, 0.0  ;;  %v576_v63 = vadd.f32 %v1661_v37, %v1606_v8 }
 0x10d   :  { %v709_v11 = vmax.f32 %v511_v3, 0.0  ;;  %v526_v13 = vadd.f32 %v1197_v5, %v1606_v8  ;;  %v805_v20 = vsel %vm743_vm2, %v710_v9, 0.0  ;;  %v828_v3 = vsel %vm743_vm2, %v719_v58, 0.0  ;;  %v630_v7 = vpop.f32.mrf.mxu1 }
 0x10e   :  { %v802_v14 = vadd.f32 %v801_v6, %v800_v4  ;;  %v520_v16 = vpop.f32.mrf.mxu0  ;;  %v721_v4 = vmax.f32 %v571_v52, 0.0  ;;  %v581_v12 = vadd.f32 %v1606_v8, %v1679_v10  ;;  %v830_v6 = vsel %vm743_vm2, %v720_v25, 0.0 }
 0x10f   :  { %v803_v18 = vsel %vm743_vm2, %v709_v11, 0.0  ;;  %v712_v19 = vmax.f32 %v526_v13, 0.0  ;;  %v521_v22 = vadd.f32 %v1606_v8, %v520_v16  ;;  %v722_v49 = vmax.f32 %v576_v63, 0.0 }
 0x110   :  { %v804_v23 = vadd.f32 %v803_v18, %v802_v14  ;;  %v586_v9 = vadd.f32 %v1673_v61, %v1606_v8  ;;  %v832_v13 = vsel %vm743_vm2, %v721_v4, 0.0  ;;  %v723_v14 = vmax.f32 %v581_v12, 0.0  ;;  %v1233_v18 = vpop.f32.mrf.mxu1 }
 0x111   :  { %v711_v26 = vmax.f32 %v521_v22, 0.0  ;;  %v814_v32 = vsel %vm743_vm2, %v712_v19, 0.0  ;;  %v591_v37 = vadd.f32 %v1606_v8, %v1691_v38  ;;  %v834_v19 = vsel %vm743_vm2, %v722_v49, 0.0 }
 0x112   :  { %v1720_v29 = vadd.f32 %v805_v20, %v804_v23  ;;  %v724_v10 = vmax.f32 %v586_v9, 0.0  ;;  %v836_v23 = vsel %vm743_vm2, %v723_v14, 0.0  ;;  %v601_v61 = vadd.f32 %v1606_v8, %v1703_v1  ;;  %v640_v27 = vpop.f32.mrf.mxu1 }
 0x113   :  { %v813_v34 = vsel %vm743_vm2, %v711_v26, 0.0  ;;  %v725_v20 = vmax.f32 %v591_v37, 0.0  ;;  %v726_v38 = vmax.f32 %v596_v21, 0.0  ;;  %v611_v24 = vadd.f32 %v1606_v8, %v610_v31 }
 0x114   :  { %v815_v35 = vadd.f32 %v814_v32, %v813_v34  ;;  %v838_v28 = vsel %vm743_vm2, %v724_v10, 0.0  ;;  %v606_v32 = vadd.f32 %v1697_v51, %v1606_v8  ;;  %v727_v15 = vmax.f32 %v601_v61, 0.0 }
 0x115   :  { %v840_v34 = vsel %vm743_vm2, %v725_v20, 0.0  ;;  %v842_v39 = vsel %vm743_vm2, %v726_v38, 0.0  ;;  %v616_v1 = vadd.f32 %v1711_v17, %v1606_v8  ;;  %v729_v44 = vmax.f32 %v611_v24, 0.0 }
 0x116   :  { %v817_v42 = vadd.f32 %v816_v36, %v815_v35  ;;  %v1236_v36 = vpop.f32.mrf.mxu1  ;;  %v728_v40 = vmax.f32 %v606_v32, 0.0  ;;  %v621_v51 = vadd.f32 %v1606_v8, %v620_v53  ;;  %v626_v31 = vadd.f32 %v1729_v41, %v1606_v8 }
 0x117   :  { %v730_v30 = vmax.f32 %v616_v1, 0.0  ;;  %v631_v17 = vadd.f32 %v1606_v8, %v630_v7  ;;  %v636_v53 = vadd.f32 %v1230_v60, %v1606_v8 }
 0x118   :  { %v819_v46 = vadd.f32 %v818_v43, %v817_v42  ;;  %v844_v43 = vsel %vm743_vm2, %v727_v15, 0.0 }
 0x11a   :  { %v821_v50 = vadd.f32 %v820_v47, %v819_v46  ;;  %v650_v46 = vpop.f32.mrf.mxu1  ;;  %v846_v47 = vsel %vm743_vm2, %v728_v40, 0.0 }
 0x11b   :  { %v651_v7 = vadd.f32 %v1606_v8, %v650_v46 }
 0x11c   :  { %v823_v56 = vadd.f32 %v822_v0, %v821_v50  ;;  %v848_v50 = vsel %vm743_vm2, %v729_v44, 0.0  ;;  %v731_v0 = vmax.f32 %v621_v51, 0.0  ;;  %v1239_v55 = vpop.f32.mrf.mxu1 }
 0x11d   :  { %v737_v37 = vmax.f32 %v651_v7, 0.0 }
 0x11e   :  { %v825_v59 = vadd.f32 %v824_v57, %v823_v56  ;;  %v850_v56 = vsel %vm743_vm2, %v730_v30, 0.0  ;;  %v732_v57 = vmax.f32 %v626_v31, 0.0  ;;  %v852_v52 = vsel %vm743_vm2, %v731_v0, 0.0  ;;  %v660_v25 = vpop.f32.mrf.mxu1 }
 0x11f   :  { %v864_v20 = vsel %vm743_vm2, %v737_v37, 0.0 }
 0x120   :  { %v827_v2 = vadd.f32 %v826_v62, %v825_v59  ;;  %v733_v59 = vmax.f32 %v631_v17, 0.0  ;;  %v641_v62 = vadd.f32 %v1606_v8, %v640_v27  ;;  %v854_v63 = vsel %vm743_vm2, %v732_v57, 0.0 }
 0x121   :  { %v807_v27 = vrot.slane %v1720_v29, 4 }
 0x122   :  { %v829_v5 = vadd.f32 %v828_v3, %v827_v2  ;;  %v734_v2 = vmax.f32 %v636_v53, 0.0  ;;  %v646_v3 = vadd.f32 %v1233_v18, %v1606_v8  ;;  %v856_v12 = vsel %vm743_vm2, %v733_v59, 0.0 }
 0x124   :  { %v831_v11 = vadd.f32 %v830_v6, %v829_v5  ;;  %v735_v5 = vmax.f32 %v641_v62, 0.0  ;;  %v1242_v6 = vpop.f32.mrf.mxu1  ;;  %v858_v49 = vsel %vm743_vm2, %v734_v2, 0.0  ;;  %v736_v9 = vmax.f32 %v646_v3, 0.0 }
 0x126   :  { %v833_v16 = vadd.f32 %v832_v13, %v831_v11  ;;  %v656_v11 = vadd.f32 %v1236_v36, %v1606_v8  ;;  %v860_v14 = vsel %vm743_vm2, %v735_v5, 0.0  ;;  %v862_v10 = vsel %vm743_vm2, %v736_v9, 0.0 }
 0x128   :  { %v835_v22 = vadd.f32 %v834_v19, %v833_v16  ;;  %v661_v16 = vadd.f32 %v1606_v8, %v660_v25  ;;  %v670_v19 = vpop.f32.mrf.mxu1  ;;  %v738_v21 = vmax.f32 %v656_v11, 0.0 }
 0x12a   :  { %v837_v26 = vadd.f32 %v836_v23, %v835_v22  ;;  %v666_v22 = vadd.f32 %v1239_v55, %v1606_v8  ;;  %v739_v61 = vmax.f32 %v661_v16, 0.0  ;;  %v866_v38 = vsel %vm743_vm2, %v738_v21, 0.0 }
 0x12c   :  { %v839_v33 = vadd.f32 %v838_v28, %v837_v26  ;;  %v671_v26 = vadd.f32 %v1606_v8, %v670_v19  ;;  %v740_v32 = vmax.f32 %v666_v22, 0.0  ;;  %v868_v15 = vsel %vm743_vm2, %v739_v61, 0.0 }
 0x12e   :  { %v841_v35 = vadd.f32 %v840_v34, %v839_v33  ;;  %v676_v33 = vadd.f32 %v1242_v6, %v1606_v8  ;;  %v741_v24 = vmax.f32 %v671_v26, 0.0 }
 0x130   :  { %v843_v42 = vadd.f32 %v842_v39, %v841_v35  ;;  %v808_v35 = vadd.f32 %v807_v27, %v1720_v29  ;;  %v870_v39 = vsel %vm743_vm2, %v740_v32, 0.0  ;;  %v742_v40 = vmax.f32 %v676_v33, 0.0 }
 0x132   :  { %v845_v45 = vadd.f32 %v844_v43, %v843_v42  ;;  %v872_v42 = vsel %vm743_vm2, %v741_v24, 0.0  ;;  %v809_v43 = vrot.slane %v808_v35, 2  ;;  %v874_v51 = vsel %vm743_vm2, %v742_v40, 0.0 }
 0x134   :  { %v847_v48 = vadd.f32 %v846_v47, %v845_v45  ;;  %v810_v46 = vadd.f32 %v809_v43, %v808_v35 }
 0x136   :  { %v849_v54 = vadd.f32 %v848_v50, %v847_v48  ;;  %v811_v30 = vrot.slane %v810_v46, 1 }
 0x138   :  { %v851_v58 = vadd.f32 %v850_v56, %v849_v54  ;;  %v812_v50 = vadd.f32 %v811_v30, %v810_v46  ;;  %v1060_v56 = vld [vmem:[%s1811_s4] ss:$0 sm:$0xff] }
 0x13a   :  { %v853_v41 = vadd.f32 %v852_v52, %v851_v58  ;;  %v883_v17 = vmul.f32 0.00390625, %v812_v50 }
 0x13c   :  { %v855_v4 = vadd.f32 %v854_v63, %v853_v41 }
 0x13e   :  { %v857_v60 = vadd.f32 %v856_v12, %v855_v4 }
 0x140   :  { %v859_v13 = vadd.f32 %v858_v49, %v857_v60 }
 0x142   :  { %v861_v18 = vadd.f32 %v860_v14, %v859_v13 }
 0x144   :  { %v863_v23 = vadd.f32 %v862_v10, %v861_v18 }
 0x146   :  { %v865_v28 = vadd.f32 %v864_v20, %v863_v23 }
 0x148   :  { %v867_v34 = vadd.f32 %v866_v38, %v865_v28 }
 0x14a   :  { %v869_v36 = vadd.f32 %v868_v15, %v867_v34 }
 0x14c   :  { %v871_v1 = vadd.f32 %v870_v39, %v869_v36 }
 0x14e   :  { %v873_v44 = vadd.f32 %v872_v42, %v871_v1 }
 0x150   :  { %v875_v45 = vadd.f32 %v874_v51, %v873_v44 }
 0x152   :  { %v876_v8 = vrot.slane %v875_v45, 4 }
 0x154   :  { %v877_v47 = vadd.f32 %v876_v8, %v875_v45 }
 0x156   :  { %v878_v31 = vrot.slane %v877_v47, 2 }
 0x158   :  { %v879_v48 = vadd.f32 %v878_v31, %v877_v47 }
 0x15a   :  { %v880_v29 = vrot.slane %v879_v48, 1 }
 0x15c   :  { %v881_v0 = vadd.f32 %v880_v29, %v879_v48 }
 0x15e   :  { %v884_v54 = vmul.f32 0.00390625, %v881_v0 }
 0x160   :  { %v899_v55 = vsel %vm898_vm4, %v884_v54, %v883_v17 }
 0x161   :  { %1252 = vmatmul.mubr.msk.f32.vlgmr.msra.gmra.mxu1 %vm743_vm2, %v899_v55 }
 0x221   :  { %v968_v57 = vpop.f32.mrf.mxu1 }
 0x222   :  { %v969_v53 = vadd.f32 %v1060_v56, %v968_v57 }
 0x223   :  { %v1253_v58 = vpop.f32.mrf.mxu1 }
 0x224   :  { %v1062_v52 = vmul.f32 -1.442695, %v969_v53 }
 0x226   :  { %1267 = vpow2.f32 %v1062_v52 }
 0x233   :  { %v1268_v59 = vpop.eup %1267 }
 0x234   :  { %v975_v62 = vadd.f32 1.0, %v1268_v59 }
 0x236   :  { %1269 = vrcp.f32 %v975_v62 }
 0x243   :  { %v1270_v41 = vpop.eup %1269 }
 0x244   :  { %979 = vst.msk [vmem:[#allocation2] sm:$0x3] %vm978_vm5, %v1270_v41 }
 0x245   :  { %1282 = shalt.err (!%p1279_p4)
}
 0x246   :  { %989 = dma.vmem_to_hbm [thread:$0]  %s987_s10, 32, %s1812_s5, [#allocation3]  }
 0x247   :  { %1291 = dma.done.wait [#allocation3], 32  }
 0x248   :  { %1292 = vsyncadd [#allocation3], 4294967264 }
 0x249   :  { %993 = vsyncpa [#allocation3], 1 }

</bundles_post_ra>
